<compile_context>
chip_gen: v7x
topology: tpu7x:2x2x1
jax: 0.10.0
libtpu: 0.0.40
codegen_flags: <defaults>
</compile_context>

<pallas_src>
import functools

import jax
import jax.numpy as jnp
from jax import lax
from jax.experimental import pallas as pl
from jax.experimental.pallas import tpu as pltpu


def _index_put_rows_kernel(idx_ref, upd_ref, x_ref, o_ref, *,
                           accumulate, n_idx, block_rows):
    # idx_ref : SMEM int32[n_idx]   row indices (duplicates allowed, normalized)
    # upd_ref : SMEM x.dtype[1]     scalar update value
    # x_ref   : VMEM [tr, C]        input row tile (aliased to o_ref's buffer)
    # o_ref   : VMEM [tr, C]
    tr, _ = o_ref.shape
    row0 = pl.program_id(0) * block_rows
    # (tr, 1) global row ids; lane broadcast happens once in the final op.
    row_ids = row0 + lax.broadcasted_iota(jnp.int32, (tr, 1), 0)
    upd = upd_ref[0]

    if accumulate:
        # Duplicate indices must add multiple times -> per-row occurrence count.
        count = (row_ids == idx_ref[0]).astype(o_ref.dtype)
        for i in range(1, n_idx):
            count = count + (row_ids == idx_ref[i]).astype(o_ref.dtype)
        o_ref[...] = x_ref[...] + count * upd            # (tr,1) bcast over lanes
    else:
        # Scalar update -> duplicates are benign (same value written).
        hit = row_ids == idx_ref[0]
        for i in range(1, n_idx):
            hit = jnp.logical_or(hit, row_ids == idx_ref[i])
        o_ref[...] = jnp.where(hit, upd, x_ref[...])


_SINGLE_BLOCK_BYTES = 1 << 20     # below this, whole array as one block
_MAX_TILE_BYTES = 4 << 20         # per-tile cap so 2 tiles x 2 buffers << scoped VMEM


def index_put(x, index, update_scalar, *, accumulate=False, block_rows=512):
    """Pallas equivalent of x.index_put_((index,), update_scalar, accumulate)."""
    R, C = x.shape
    itemsize = x.dtype.itemsize
    nbytes = R * C * itemsize

    idx = index.astype(jnp.int32)
    idx = jnp.where(idx < 0, idx + R, idx)               # PyTorch negative-index wrap
    upd = jnp.reshape(update_scalar.astype(x.dtype), (1,))
    n_idx = int(idx.shape[0])

    if nbytes <= _SINGLE_BLOCK_BYTES or R <= block_rows:
        # Tiny / short arrays: single full-array block, grid of 1 (no tiling
        # overhead; 8x8 test case lands here and is pure launch overhead).
        block_rows = R
    else:
        # Lane-dense row tiles: full C last (unmasked vst when C % 128 == 0),
        # tall row tiles for HBM-roofline efficiency, capped for VMEM.
        rows_cap = max(8, (_MAX_TILE_BYTES // (C * itemsize)) // 8 * 8)
        block_rows = max(8, min(block_rows, rows_cap, R) // 8 * 8)

    grid_rows = pl.cdiv(R, block_rows)

    kernel = functools.partial(
        _index_put_rows_kernel,
        accumulate=accumulate, n_idx=n_idx, block_rows=block_rows,
    )

    return pl.pallas_call(
        kernel,
        out_shape=jax.ShapeDtypeStruct((R, C), x.dtype),
        grid=(grid_rows,),
        in_specs=[
            pl.BlockSpec(memory_space=pltpu.SMEM),            # row indices
            pl.BlockSpec(memory_space=pltpu.SMEM),             # scalar update
            pl.BlockSpec((block_rows, C), lambda i: (i, 0)),    # x row tile
        ],
        out_specs=pl.BlockSpec((block_rows, C), lambda i: (i, 0)),
        input_output_aliases={2: 0},                            # in-place semantics
        compiler_params=pltpu.CompilerParams(
            dimension_semantics=("parallel",),                  # v7x: 2 TCs share row tiles
        ),
        cost_estimate=pl.CostEstimate(
            flops=2 * R * C, transcendentals=0, bytes_accessed=2 * nbytes,
        ),
    )(idx, upd, x)


class PutModel:
    """JAX/Pallas port of put_model(accumulate, index_len=1, update_rank=0)."""

    def __init__(self, accumulate=False):
        self.accumulate = accumulate
        # index_len == 1, update_rank == 0 -> scalar update, single index tensor
        self.index = jnp.array([6, 2, 5, 5], dtype=jnp.int32)
        key = jax.random.PRNGKey(0)
        self.update = jax.random.normal(key, ()) * 20.0   # torch.randn([]) * 20

    def __call__(self, x):
        return index_put(x, self.index, self.update, accumulate=self.accumulate)


if __name__ == "__main__":
    key = jax.random.PRNGKey(0)
    k_x, k_big = jax.random.split(key)

    # --- tiny path (shape implied by the module: first dim > max index 6) ---
    x = jax.random.normal(k_x, (8, 8), dtype=jnp.float32)

    model = PutModel(accumulate=False)
    out = jax.block_until_ready(model(x))
    ref = x.at[model.index].set(model.update.astype(x.dtype))
    assert out.shape == x.shape and out.dtype == x.dtype
    assert jnp.allclose(out, ref, atol=1e-6), "mismatch vs reference (set, 8x8)"

    model_acc = PutModel(accumulate=True)
    out_acc = jax.block_until_ready(model_acc(x))
    ref_acc = x.at[model_acc.index].add(model_acc.update.astype(x.dtype))
    assert jnp.allclose(out_acc, ref_acc, atol=1e-5), "mismatch vs reference (add, 8x8)"

    # --- tiled path (row grid, lane-dense 512x256 tiles, multi-TC on v7x) ---
    xb = jax.random.normal(k_big, (2048, 256), dtype=jnp.float32)
    idx_b = jnp.array([6, 2, 5, 5, 777, 1500, -1], dtype=jnp.int32)
    upd_b = jnp.float32(3.5)
    idx_b_norm = jnp.where(idx_b < 0, idx_b + xb.shape[0], idx_b)

    out_b_add = jax.block_until_ready(index_put(xb, idx_b, upd_b, accumulate=True))
    ref_b_add = xb.at[idx_b_norm].add(upd_b)
    assert jnp.allclose(out_b_add, ref_b_add, atol=1e-5), "mismatch vs reference (add, tiled)"

    out_b_set = jax.block_until_ready(index_put(xb, idx_b, upd_b, accumulate=False))
    ref_b_set = xb.at[idx_b_norm].set(upd_b)
    assert jnp.allclose(out_b_set, ref_b_set, atol=1e-6), "mismatch vs reference (set, tiled)"

    print("KERNEL_OK")
</pallas_src>

<mosaic_0001>
module attributes {stable_mosaic.version = 11 : i64} {
  func.func @_index_put_rows_kernel(%arg0: i32, %arg1: memref<4xi32, #tpu.memory_space<smem>>, %arg2: memref<1xf32, #tpu.memory_space<smem>>, %arg3: memref<8x8xf32, #tpu.memory_space<vmem>>, %arg4: memref<8x8xf32, #tpu.memory_space<vmem>>) attributes {dimension_semantics = [#tpu.dimension_semantics<parallel>], iteration_bounds = array<i64: 1>, scalar_prefetch = 0 : i64, scratch_operands = 0 : i64, tpu.core_type = #tpu.core_type<tc>, window_params = [{transform_indices = @transform_0, window_bounds = array<i64: 4>}, {transform_indices = @transform_1, window_bounds = array<i64: 1>}, {transform_indices = @transform_2, window_bounds = array<i64: 8, 8>}, {transform_indices = @transform_3, window_bounds = array<i64: 8, 8>}]} {
    %c8_i32 = arith.constant 8 : i32
    %0 = arith.muli %arg0, %c8_i32 : i32
    %1 = tpu.iota {dimensions = array<i32: 0>} : vector<8x1xi32>
    %2 = vector.broadcast %0 : i32 to vector<8x1xi32>
    %3 = arith.addi %2, %1 : vector<8x1xi32>
    %c0 = arith.constant 0 : index
    %4 = memref.load %arg2[%c0] : memref<1xf32, #tpu.memory_space<smem>>
    %c0_0 = arith.constant 0 : index
    %5 = memref.load %arg1[%c0_0] : memref<4xi32, #tpu.memory_space<smem>>
    %6 = vector.broadcast %5 : i32 to vector<8x1xi32>
    %7 = arith.cmpi eq, %3, %6 : vector<8x1xi32>
    %c1 = arith.constant 1 : index
    %8 = memref.load %arg1[%c1] : memref<4xi32, #tpu.memory_space<smem>>
    %9 = vector.broadcast %8 : i32 to vector<8x1xi32>
    %10 = arith.cmpi eq, %3, %9 : vector<8x1xi32>
    %11 = arith.ori %7, %10 : vector<8x1xi1>
    %c2 = arith.constant 2 : index
    %12 = memref.load %arg1[%c2] : memref<4xi32, #tpu.memory_space<smem>>
    %13 = vector.broadcast %12 : i32 to vector<8x1xi32>
    %14 = arith.cmpi eq, %3, %13 : vector<8x1xi32>
    %15 = arith.ori %11, %14 : vector<8x1xi1>
    %c3 = arith.constant 3 : index
    %16 = memref.load %arg1[%c3] : memref<4xi32, #tpu.memory_space<smem>>
    %17 = vector.broadcast %16 : i32 to vector<8x1xi32>
    %18 = arith.cmpi eq, %3, %17 : vector<8x1xi32>
    %19 = arith.ori %15, %18 : vector<8x1xi1>
    %c0_1 = arith.constant 0 : index
    %c0_2 = arith.constant 0 : index
    %20 = vector.load %arg3[%c0_1, %c0_2] : memref<8x8xf32, #tpu.memory_space<vmem>>, vector<8x8xf32>
    %21 = vector.shape_cast %19 : vector<8x1xi1> to vector<8x1xi1>
    %22 = vector.broadcast %21 : vector<8x1xi1> to vector<8x8xi1>
    %23 = vector.broadcast %4 : f32 to vector<8x8xf32>
    %24 = arith.select %22, %23, %20 : vector<8x8xi1>, vector<8x8xf32>
    %c0_3 = arith.constant 0 : index
    %c0_4 = arith.constant 0 : index
    %25 = vector.load %arg4[%c0_3, %c0_4] : memref<8x8xf32, #tpu.memory_space<vmem>>, vector<8x8xf32>
    tpu.vector_store %arg4[%c0_3, %c0_4], %24 {strides = array<i32>} : memref<8x8xf32, #tpu.memory_space<vmem>>, vector<8x8xf32>,
    return
  }
  func.func @transform_0(%arg0: i32) -> i32 {
    %c0_i32 = arith.constant 0 : i32
    %c0_i32_0 = arith.constant 0 : i32
    return %c0_i32 : i32
  }
  func.func @transform_1(%arg0: i32) -> i32 {
    %c0_i32 = arith.constant 0 : i32
    %c0_i32_0 = arith.constant 0 : i32
    return %c0_i32 : i32
  }
  func.func @transform_2(%arg0: i32) -> (i32, i32) {
    %c0_i32 = arith.constant 0 : i32
    %c0_i32_0 = arith.constant 0 : i32
    return %arg0, %c0_i32 : i32, i32
  }
  func.func @transform_3(%arg0: i32) -> (i32, i32) {
    %c0_i32 = arith.constant 0 : i32
    %c0_i32_0 = arith.constant 0 : i32
    return %arg0, %c0_i32 : i32, i32
  }
}

</mosaic_0001>

<bundles_post_ra>
// kernel: tpu_custom_call.1
= control target key start
LH: loop header
LB: loop body
LE: loop exit
PB: predicated region body
PF: predicated region fallthrough
CT: control target
= control target key end

     0   :  { %9 = vsyncpa [#allocation6], 0  ;;  %s206_s0 = inlined_call_operand.vmem [shape: s32[4], index: 0, kind: input, shape index: {}]   ;;  %s207_s1 = inlined_call_operand.<no memory space> [shape: f32[1], index: 1, kind: input, shape index: {}]   ;;  %s208_s2 = inlined_call_operand.hbm [shape: f32[8,8], index: 2, kind: input, shape index: {}, may-alias: {2,3}]   ;;  %s209_s3 = inlined_call_operand.hbm [shape: f32[8,8], index: 3, kind: output, shape index: {}, may-alias: {2,3}]  }
   0x1   :  { %10 = vsyncpa [#allocation4], 0 }
   0x2   :  { %11 = vsyncpa [#allocation5], 0  ;;  %s18_s14 = sshll.u32 %s206_s0, 4  ;;  %s19_s14 = int_to_ptr.vmem [resolvable:$true] %s18_s14 }
   0x3   :  { %s91_s15 = scalar_lea.vmem %s19_s14, 16  ;;  %p96_p1 = scmp.lt.s32.totalorder %s19_s14, %s19_s14 }
   0x4   :  { %p92_p0 = scmp.ne.s32.totalorder %s19_s14, %s91_s15  ;;  %p97_p2 = scmp.lt.s32.totalorder %s91_s15, %s91_s15 }
   0x6   :  { %p98_p3 = por %p97_p2, %p96_p1 }
   0x8   :  { %p99_p4 = pnand %p98_p3, %p92_p0 }
   0xa   :  { %102 = shalt.err (!%p99_p4)
}
   0xb   :  { %s153_s16 = smov [#allocation3]   ;;  %s154_s17 = smov [#allocation7]  }
   0xc   :  { %21 = dma.vmem_to_smem %s19_s14, 16, %s153_s16, [#allocation6]  }
   0xd   :  { %s30_s18 = sshll.u32 %s154_s17, 4  ;;  %s103_s21 = scalar_lea.hbm %s208_s2, 128  ;;  %s31_s18 = int_to_ptr.vmem [resolvable:$true] %s30_s18 }
   0xe   :  { %p104_p5 = scmp.ne.s32.totalorder %s208_s2, %s103_s21  ;;  %p107_p6 = scmp.lt.u32.totalorder %s103_s21, %s208_s2 }
  0x10   :  { %p109_p7 = pnand %p107_p6, %p104_p5 }
  0x12   :  { %112 = shalt.err (!%p109_p7)
}
  0x13   :  { %s113_s25 = scalar_lea.vmem %s31_s18, 128  ;;  %p118_p9 = scmp.lt.s32.totalorder %s31_s18, %s31_s18 }
  0x14   :  { %p114_p8 = scmp.ne.s32.totalorder %s31_s18, %s113_s25  ;;  %p119_p10 = scmp.lt.s32.totalorder %s113_s25, %s113_s25 }
  0x16   :  { %p120_p11 = por %p119_p10, %p118_p9 }
  0x18   :  { %p121_p12 = pnand %p120_p11, %p114_p8 }
  0x1a   :  { %124 = shalt.err (!%p121_p12)
}
  0x1b   :  { %33 = dma.hbm_to_vmem [thread:$0]  %s208_s2, 128, %s31_s18, [#allocation4]  }
  0x1c   :  { %147 = dma.done.wait [#allocation6], 16  }
  0x1d   :  { %148 = vsyncadd [#allocation6], 4294967280 }
  0x1e   :  { %149 = dma.done.wait [#allocation4], 128  }
  0x1f   :  { %150 = vsyncadd [#allocation4], 4294967168 }
  0x20   :  { %40 = sfence }
  0x21   :  { %v42_v0 = vlaneseq  ;;  %s47_s28 = sld [smem:[#allocation3]]  ;;  %s85_s29 = sld [smem:[#allocation3 + $0x1]]  ;;  %v62_v6 = vld [vmem:[#allocation7] sm:$0xff]  ;;  %v65_v7 = vstv %s207_s1  ;;  %vm67_vm6 = vcmask 64512  }
  0x22   :  { %s86_s30 = sld [smem:[#allocation3 + $0x2]]  ;;  %s87_s4 = sld [smem:[#allocation3 + $0x3]] }
  0x23   :  { %v43_v1 = vshrl.u32 %v42_v0, 7  ;;  %s155_s5 = smov [#allocation8]  }
  0x24   :  { %s75_s6 = sshll.u32 %s155_s5, 4  ;;  %s76_s6 = int_to_ptr.vmem [resolvable:$true] %s75_s6 }
  0x25   :  { %s125_s8 = scalar_lea.vmem %s76_s6, 128  ;;  %p130_p0 = scmp.lt.s32.totalorder %s76_s6, %s76_s6 }
  0x26   :  { %p126_p13 = scmp.ne.s32.totalorder %s76_s6, %s125_s8  ;;  %p131_p1 = scmp.lt.s32.totalorder %s125_s8, %s125_s8 }
  0x27   :  { %v48_v2 = vstv %s47_s28  ;;  %v51_v3 = vstv %s85_s29 }
  0x28   :  { %vm49_vm0 = vcmp.eq.s32.totalorder %v43_v1, %v48_v2  ;;  %vm52_vm1 = vcmp.eq.s32.totalorder %v43_v1, %v51_v3  ;;  %v55_v4 = vstv %s86_s30  ;;  %v59_v5 = vstv %s87_s4  ;;  %p132_p2 = por %p131_p1, %p130_p0 }
  0x29   :  { %vm53_vm2 = vmor %vm49_vm0, %vm52_vm1  ;;  %vm56_vm3 = vcmp.eq.s32.totalorder %v43_v1, %v55_v4  ;;  %vm60_vm4 = vcmp.eq.s32.totalorder %v43_v1, %v59_v5 }
  0x2a   :  { %vm57_vm5 = vmor %vm53_vm2, %vm56_vm3  ;;  %p133_p3 = pnand %p132_p2, %p126_p13 }
  0x2b   :  { %vm61_vm7 = vmor %vm57_vm5, %vm60_vm4 }
  0x2c   :  { %v66_v8 = vsel %vm61_vm7, %v65_v7, %v62_v6 }
  0x2d   :  { %68 = vst.msk [vmem:[#allocation8] sm:$0xff] %vm67_vm6, %v66_v8 }
  0x2e   :  { %136 = shalt.err (!%p133_p3)
}
  0x2f   :  { %s137_s11 = scalar_lea.hbm %s209_s3, 128 }
  0x30   :  { %p138_p4 = scmp.ne.s32.totalorder %s209_s3, %s137_s11  ;;  %p141_p5 = scmp.lt.u32.totalorder %s137_s11, %s209_s3 }
  0x32   :  { %p143_p6 = pnand %p141_p5, %p138_p4 }
  0x34   :  { %146 = shalt.err (!%p143_p6)
}
  0x35   :  { %78 = dma.vmem_to_hbm [thread:$0]  %s76_s6, 128, %s209_s3, [#allocation5]  }
  0x36   :  { %151 = dma.done.wait [#allocation5], 128  }
  0x37   :  { %152 = vsyncadd [#allocation5], 4294967168 }
  0x38   :  { %82 = vsyncpa [#allocation4], 1 }
  0x39   :  { %83 = vsyncpa [#allocation5], 1 }
  0x3a   :  { %84 = vsyncpa [#allocation6], 1 }

</bundles_post_ra>
